<compile_context>
chip_gen: v7x
topology: tpu7x:2x2x1
jax: 0.10.0
libtpu: 0.0.40
codegen_flags: <defaults>
</compile_context>

<pallas_src>
import jax
import jax.numpy as jnp
from jax.experimental import pallas as pl
from jax.experimental.pallas import tpu as pltpu

HIDDEN = 512


def _round_up(x, m):
    return ((x + m - 1) // m) * m


def _choose_tb(batch, tb_max=1024):
    """Adaptive batch-tile size.

    Tiny batches get a single tile.  Otherwise pick the largest candidate
    <= min(tb_max, ~batch/2) (so the grid has >= 2 steps for v7x's two
    TensorCores) whose batch-padding waste is <= 12.5%.
    """
    b8 = _round_up(max(batch, 1), 8)
    if b8 <= 128:                       # trivial batch: one tile, minimal pad
        return b8
    cap = min(tb_max, _round_up((b8 + 1) // 2, 8))   # ensure >= 2 grid steps
    for tb in (1024, 768, 512, 384, 256, 128, 64, 32, 16, 8):
        if tb > cap:
            continue
        pad = _round_up(b8, tb)
        if (pad - batch) * 8 <= pad:    # padding waste <= 12.5% of total work
            return tb
    return 8


def mlp_kernel(x_ref, w1_ref, b1_ref, w2_ref, b2_ref, w3_ref, b3_ref, o_ref):
    # Layer 1: Linear + ReLU, f32 operands (x read directly, no wrapper cast),
    # f32 accumulation on the MXU.
    h1 = jnp.dot(x_ref[...], w1_ref[...], preferred_element_type=jnp.float32)
    h1 = jnp.maximum(h1 + b1_ref[...], 0.0)

    # Layer 2: Linear + ReLU, bf16 operands on the MXU, f32 accumulation.
    h2 = jnp.dot(h1.astype(jnp.bfloat16), w2_ref[...],
                 preferred_element_type=jnp.float32)
    h2 = jnp.maximum(h2 + b2_ref[...], 0.0)

    # Dropout(0.1): identity at inference.
    # TODO(synk): training-mode dropout (RNG mask + 1/(1-p) scaling) not implemented.

    # Layer 3: N=1 output head -> VPU multiply + cross-lane (XLU) reduce instead
    # of an N=1 MXU matmul; result stored lane-dense as a (1, TB) row.
    row = jnp.sum(h2 * w3_ref[...], axis=-1)[None, :] + b3_ref[...]   # (1, TB)
    o_ref[...] = row.astype(o_ref.dtype)


def prepare_params(w1, b1, w2, b2, w3, b3):
    """One-time conversion of PyTorch-layout params into kernel-ready buffers.

    PyTorch layout: W (out_features, in_features), b (out_features,).
    Kernel layout:  W (in_features, out_features) so the kernel does y = x @ W + b.
    Call once and reuse — keeps the per-forward HBM traffic to x and the
    already-cast weights (review: hoist pad/cast out of the forward path).
    """
    h = w1.shape[0]
    return (
        jnp.asarray(w1, jnp.float32).T,                    # (K, H) f32 (layer 1 stays f32)
        jnp.asarray(b1, jnp.float32).reshape(1, h),        # (1, H) f32
        jnp.asarray(w2, jnp.float32).T.astype(jnp.bfloat16),  # (H, H) bf16 MXU operand
        jnp.asarray(b2, jnp.float32).reshape(1, h),        # (1, H) f32
        jnp.asarray(w3, jnp.float32).reshape(1, h),        # (1, H) f32 lane-dense row
        jnp.asarray(b3, jnp.float32).reshape(1, 1),        # (1, 1) f32
    )


def mlp_forward(x, params, *, tb_max=1024):
    """x: (B, K) float32; params from prepare_params(). Returns (B, 1) float32."""
    w1, b1, w2, b2, w3_row, b3 = params
    B, K = x.shape
    H = w1.shape[1]

    TB = _choose_tb(B, tb_max)
    B_pad = _round_up(max(B, 1), TB)
    if B_pad != B:
        x = jnp.pad(x, ((0, B_pad - B), (0, 0)))
    G = B_pad // TB

    out = pl.pallas_call(
        mlp_kernel,
        out_shape=jax.ShapeDtypeStruct((G, 1, TB), jnp.float32),
        grid_spec=pltpu.PrefetchScalarGridSpec(
            num_scalar_prefetch=0,
            grid=(G,),
            in_specs=[
                # x: per-tile block, full feature width (no wrapper pad/cast).
                pl.BlockSpec((TB, K), lambda i: (i, 0)),
                # Weights/biases: constant block index -> DMA'd once, VMEM-resident.
                pl.BlockSpec((K, H), lambda i: (0, 0)),    # w1 (f32)
                pl.BlockSpec((1, H), lambda i: (0, 0)),    # b1
                pl.BlockSpec((H, H), lambda i: (0, 0)),    # w2 (bf16)
                pl.BlockSpec((1, H), lambda i: (0, 0)),    # b2
                pl.BlockSpec((1, H), lambda i: (0, 0)),    # w3 row
                pl.BlockSpec((1, 1), lambda i: (0, 0)),    # b3
            ],
            # Lane-dense output: one (1, TB) row per tile (leading dim squeezed).
            out_specs=pl.BlockSpec((None, 1, TB), lambda i: (i, 0, 0)),
        ),
        compiler_params=pltpu.CompilerParams(
            dimension_semantics=("parallel",)),
    )(x, w1, b1, w2, b2, w3_row, b3)

    return out.reshape(B_pad, 1)[:B]


def init_params_torch_layout(key, n_inputs, hidden=HIDDEN):
    """Deterministic synthetic params in PyTorch nn.Linear layout/init bounds."""
    ks = jax.random.split(key, 6)

    def uinit(k, shape, fan_in):
        bound = 1.0 / jnp.sqrt(fan_in)
        return jax.random.uniform(k, shape, jnp.float32, -bound, bound)

    w1 = uinit(ks[0], (hidden, n_inputs), n_inputs)   # (out, in)
    b1 = uinit(ks[1], (hidden,), n_inputs)
    w2 = uinit(ks[2], (hidden, hidden), hidden)
    b2 = uinit(ks[3], (hidden,), hidden)
    w3 = uinit(ks[4], (1, hidden), hidden)
    b3 = uinit(ks[5], (1,), hidden)
    return w1, b1, w2, b2, w3, b3


if __name__ == "__main__":
    key = jax.random.PRNGKey(0)
    k_x, k_p = jax.random.split(key)

    batch = 8
    n_inputs = 32  # number of tabular features

    x = jax.random.normal(k_x, (batch, n_inputs), dtype=jnp.float32)
    torch_params = init_params_torch_layout(k_p, n_inputs)

    # One-time weight preparation (hoisted out of the forward path).
    params = prepare_params(*torch_params)
    jax.block_until_ready(params)

    out = mlp_forward(x, params)
    jax.block_until_ready(out)

    # Reference check against plain f32 JAX (same math as PyTorch eval forward).
    # Tolerance covers the bf16 operands of layer 2.
    w1, b1, w2, b2, w3, b3 = torch_params
    h1 = jnp.maximum(x @ w1.T + b1, 0.0)
    h2 = jnp.maximum(h1 @ w2.T + b2, 0.0)
    ref = (h2 @ w3.T + b3).reshape(batch, 1)

    assert out.shape == (batch, 1)
    assert jnp.allclose(out, ref, atol=2e-2, rtol=2e-2), (
        f"max abs err {jnp.max(jnp.abs(out - ref))}")

    print("KERNEL_OK")
</pallas_src>

<mosaic_0001>
module attributes {stable_mosaic.version = 11 : i64} {
  func.func @mlp_kernel(%arg0: i32, %arg1: memref<8x32xf32, #tpu.memory_space<vmem>>, %arg2: memref<32x512xf32, #tpu.memory_space<vmem>>, %arg3: memref<1x512xf32, #tpu.memory_space<vmem>>, %arg4: memref<512x512xbf16, #tpu.memory_space<vmem>>, %arg5: memref<1x512xf32, #tpu.memory_space<vmem>>, %arg6: memref<1x512xf32, #tpu.memory_space<vmem>>, %arg7: memref<1x1xf32, #tpu.memory_space<vmem>>, %arg8: memref<1x1x8xf32, #tpu.memory_space<vmem>>) attributes {dimension_semantics = [#tpu.dimension_semantics<parallel>], iteration_bounds = array<i64: 1>, scalar_prefetch = 0 : i64, scratch_operands = 0 : i64, tpu.core_type = #tpu.core_type<tc>, window_params = [{transform_indices = @transform_0, window_bounds = array<i64: 8, 32>}, {pipeline_mode = #tpu.pipeline_mode<synchronous>, transform_indices = @transform_1, window_bounds = array<i64: 32, 512>}, {pipeline_mode = #tpu.pipeline_mode<synchronous>, transform_indices = @transform_2, window_bounds = array<i64: 1, 512>}, {pipeline_mode = #tpu.pipeline_mode<synchronous>, transform_indices = @transform_3, window_bounds = array<i64: 512, 512>}, {pipeline_mode = #tpu.pipeline_mode<synchronous>, transform_indices = @transform_4, window_bounds = array<i64: 1, 512>}, {pipeline_mode = #tpu.pipeline_mode<synchronous>, transform_indices = @transform_5, window_bounds = array<i64: 1, 512>}, {pipeline_mode = #tpu.pipeline_mode<synchronous>, transform_indices = @transform_6, window_bounds = array<i64: 1, 1>}, {transform_indices = @transform_7, window_bounds = array<i64: 1, 1, 8>}]} {
    %c0 = arith.constant 0 : index
    %c0_0 = arith.constant 0 : index
    %0 = vector.load %arg1[%c0, %c0_0] : memref<8x32xf32, #tpu.memory_space<vmem>>, vector<8x32xf32>
    %c0_1 = arith.constant 0 : index
    %c0_2 = arith.constant 0 : index
    %1 = vector.load %arg2[%c0_1, %c0_2] : memref<32x512xf32, #tpu.memory_space<vmem>>, vector<32x512xf32>
    %cst = arith.constant dense<0.000000e+00> : vector<8x512xf32>
    %2 = tpu.matmul %0, %1, %cst {dimension_numbers = #tpu.dot_dimension_numbers<[1], [0], [0], [1], [0, 0, 1, 1], [], []>} : vector<8x32xf32>, vector<32x512xf32>, vector<8x512xf32> -> vector<8x512xf32>
    %c0_3 = arith.constant 0 : index
    %c0_4 = arith.constant 0 : index
    %3 = vector.load %arg3[%c0_3, %c0_4] : memref<1x512xf32, #tpu.memory_space<vmem>>, vector<1x512xf32>
    %4 = vector.broadcast %3 : vector<1x512xf32> to vector<8x512xf32>
    %5 = arith.addf %2, %4 : vector<8x512xf32>
    %cst_5 = arith.constant 0.000000e+00 : f32
    %6 = vector.broadcast %cst_5 : f32 to vector<8x512xf32>
    %7 = arith.maximumf %5, %6 : vector<8x512xf32>
    %8 = arith.truncf %7 : vector<8x512xf32> to vector<8x512xbf16>
    %c0_6 = arith.constant 0 : index
    %c0_7 = arith.constant 0 : index
    %9 = vector.load %arg4[%c0_6, %c0_7] : memref<512x512xbf16, #tpu.memory_space<vmem>>, vector<512x512xbf16>
    %cst_8 = arith.constant dense<0.000000e+00> : vector<8x512xf32>
    %10 = tpu.matmul %8, %9, %cst_8 {dimension_numbers = #tpu.dot_dimension_numbers<[1], [0], [0], [1], [0, 0, 1, 1], [], []>} : vector<8x512xbf16>, vector<512x512xbf16>, vector<8x512xf32> -> vector<8x512xf32>
    %c0_9 = arith.constant 0 : index
    %c0_10 = arith.constant 0 : index
    %11 = vector.load %arg5[%c0_9, %c0_10] : memref<1x512xf32, #tpu.memory_space<vmem>>, vector<1x512xf32>
    %12 = vector.broadcast %11 : vector<1x512xf32> to vector<8x512xf32>
    %13 = arith.addf %10, %12 : vector<8x512xf32>
    %cst_11 = arith.constant 0.000000e+00 : f32
    %14 = vector.broadcast %cst_11 : f32 to vector<8x512xf32>
    %15 = arith.maximumf %13, %14 : vector<8x512xf32>
    %c0_12 = arith.constant 0 : index
    %c0_13 = arith.constant 0 : index
    %16 = vector.load %arg6[%c0_12, %c0_13] : memref<1x512xf32, #tpu.memory_space<vmem>>, vector<1x512xf32>
    %17 = vector.broadcast %16 : vector<1x512xf32> to vector<8x512xf32>
    %18 = arith.mulf %15, %17 : vector<8x512xf32>
    %cst_14 = arith.constant dense<0.000000e+00> : vector<8xf32>
    %19 = vector.multi_reduction <add>, %18, %cst_14 [1] : vector<8x512xf32> to vector<8xf32>
    %20 = vector.shape_cast %19 : vector<8xf32> to vector<1x8xf32>
    %c0_15 = arith.constant 0 : index
    %c0_16 = arith.constant 0 : index
    %21 = vector.load %arg7[%c0_15, %c0_16] : memref<1x1xf32, #tpu.memory_space<vmem>>, vector<1x1xf32>
    %22 = vector.broadcast %21 : vector<1x1xf32> to vector<1x8xf32>
    %23 = arith.addf %20, %22 : vector<1x8xf32>
    %c0_17 = arith.constant 0 : index
    %c0_18 = arith.constant 0 : index
    %c0_19 = arith.constant 0 : index
    %24 = vector.load %arg8[%c0_17, %c0_18, %c0_19] : memref<1x1x8xf32, #tpu.memory_space<vmem>>, vector<1x1x8xf32>
    %25 = vector.shape_cast %24 : vector<1x1x8xf32> to vector<1x8xf32>
    %26 = vector.shape_cast %23 : vector<1x8xf32> to vector<1x1x8xf32>
    tpu.vector_store %arg8[%c0_17, %c0_18, %c0_19], %26 {strides = array<i32>} : memref<1x1x8xf32, #tpu.memory_space<vmem>>, vector<1x1x8xf32>,
    return
  }
  func.func @transform_0(%arg0: i32) -> (i32, i32) {
    %c0_i32 = arith.constant 0 : i32
    %c0_i32_0 = arith.constant 0 : i32
    return %arg0, %c0_i32 : i32, i32
  }
  func.func @transform_1(%arg0: i32) -> (i32, i32) {
    %c0_i32 = arith.constant 0 : i32
    %c0_i32_0 = arith.constant 0 : i32
    %c0_i32_1 = arith.constant 0 : i32
    return %c0_i32, %c0_i32_0 : i32, i32
  }
  func.func @transform_2(%arg0: i32) -> (i32, i32) {
    %c0_i32 = arith.constant 0 : i32
    %c0_i32_0 = arith.constant 0 : i32
    %c0_i32_1 = arith.constant 0 : i32
    return %c0_i32, %c0_i32_0 : i32, i32
  }
  func.func @transform_3(%arg0: i32) -> (i32, i32) {
    %c0_i32 = arith.constant 0 : i32
    %c0_i32_0 = arith.constant 0 : i32
    %c0_i32_1 = arith.constant 0 : i32
    return %c0_i32, %c0_i32_0 : i32, i32
  }
  func.func @transform_4(%arg0: i32) -> (i32, i32) {
    %c0_i32 = arith.constant 0 : i32
    %c0_i32_0 = arith.constant 0 : i32
    %c0_i32_1 = arith.constant 0 : i32
    return %c0_i32, %c0_i32_0 : i32, i32
  }
  func.func @transform_5(%arg0: i32) -> (i32, i32) {
    %c0_i32 = arith.constant 0 : i32
    %c0_i32_0 = arith.constant 0 : i32
    %c0_i32_1 = arith.constant 0 : i32
    return %c0_i32, %c0_i32_0 : i32, i32
  }
  func.func @transform_6(%arg0: i32) -> (i32, i32) {
    %c0_i32 = arith.constant 0 : i32
    %c0_i32_0 = arith.constant 0 : i32
    %c0_i32_1 = arith.constant 0 : i32
    return %c0_i32, %c0_i32_0 : i32, i32
  }
  func.func @transform_7(%arg0: i32) -> (i32, i32, i32) {
    %c0_i32 = arith.constant 0 : i32
    %c0_i32_0 = arith.constant 0 : i32
    %c0_i32_1 = arith.constant 0 : i32
    return %arg0, %c0_i32, %c0_i32_0 : i32, i32, i32
  }
}

</mosaic_0001>

<bundles_post_ra>
// kernel: tpu_custom_call.1
= control target key start
LH: loop header
LB: loop body
LE: loop exit
PB: predicated region body
PF: predicated region fallthrough
CT: control target
= control target key end

     0   :  { %s1886_s0 = inlined_call_operand.hbm [shape: f32[8,32], index: 0, kind: input, shape index: {}]   ;;  %s1887_s1 = inlined_call_operand.hbm [shape: f32[32,512], index: 1, kind: input, shape index: {}]   ;;  %s1888_s2 = inlined_call_operand.vmem [shape: f32[1,512], index: 2, kind: input, shape index: {}]   ;;  %s1889_s3 = inlined_call_operand.hbm [shape: bf16[512,512], index: 3, kind: input, shape index: {}]   ;;  %s1890_s4 = inlined_call_operand.vmem [shape: f32[1,512], index: 4, kind: input, shape index: {}]   ;;  %s1891_s5 = inlined_call_operand.vmem [shape: f32[1,512], index: 5, kind: input, shape index: {}]   ;;  %s1892_s6 = inlined_call_operand.<no memory space> [shape: f32[1,1], index: 6, kind: input, shape index: {}]   ;;  %s1893_s7 = inlined_call_operand.hbm [shape: f32[1,1,8], index: 7, kind: output, shape index: {}]  }
   0x1   :  { %v12_v0 = vstv %s1892_s6 }
   0x2   :  { %13 = vst [vmem:[#allocation2] sm:$0x1] %v12_v0 }
   0x3   :  { %14 = vsyncpa [#allocation4], 0 }
   0x4   :  { %15 = vsyncpa [#allocation7], 0 }
   0x5   :  { %16 = vsyncpa [#allocation5], 0  ;;  %s1742_s26 = smov [#allocation6]   ;;  %s1648_s30 = scalar_lea.hbm %s1887_s1, 2048 }
   0x6   :  { %s32_s27 = sshll.u32 %s1742_s26, 4  ;;  %p1649_p0 = scmp.ne.s32.totalorder %s1887_s1, %s1648_s30  ;;  %s33_s27 = int_to_ptr.vmem [resolvable:$true] %s32_s27 }
   0x7   :  { %p1652_p1 = scmp.lt.u32.totalorder %s1648_s30, %s1887_s1 }
   0x9   :  { %p1654_p2 = pnand %p1652_p1, %p1649_p0 }
   0xb   :  { %1657 = shalt.err (!%p1654_p2)
}
   0xc   :  { %s1658_s6 = scalar_lea.vmem %s33_s27, 2048  ;;  %p1663_p4 = scmp.lt.s32.totalorder %s33_s27, %s33_s27 }
   0xd   :  { %p1659_p3 = scmp.ne.s32.totalorder %s33_s27, %s1658_s6  ;;  %p1664_p5 = scmp.lt.s32.totalorder %s1658_s6, %s1658_s6 }
   0xf   :  { %p1665_p6 = por %p1664_p5, %p1663_p4 }
  0x11   :  { %p1666_p7 = pnand %p1665_p6, %p1659_p3 }
  0x13   :  { %1669 = shalt.err (!%p1666_p7)
}
  0x14   :  { %s1743_s12 = smov 512   ;;  %s1744_s13 = smov 32  }
  0x15   :  { %38 = dma.hbm_to_vmem [thread:$0]  %s1887_s1, 2048, %s33_s27, [#allocation7], %s1743_s12, %s1743_s12, %s1744_s13  }
  0x16   :  { %s1745_s16 = smov [#allocation3]   ;;  %s1746_s18 = smov [#allocation8]  }
  0x17   :  { %s23_s17 = sshll.u32 %s1745_s16, 4  ;;  %s46_s19 = sshll.u32 %s1746_s18, 4  ;;  %s24_s17 = int_to_ptr.vmem [resolvable:$true] %s23_s17  ;;  %s47_s19 = int_to_ptr.vmem [resolvable:$true] %s46_s19 }
  0x18   :  { %s1670_s22 = scalar_lea.hbm %s1886_s0, 128 }
  0x19   :  { %p1671_p8 = scmp.ne.s32.totalorder %s1886_s0, %s1670_s22  ;;  %p1674_p9 = scmp.lt.u32.totalorder %s1670_s22, %s1886_s0 }
  0x1b   :  { %p1676_p10 = pnand %p1674_p9, %p1671_p8 }
  0x1d   :  { %1679 = shalt.err (!%p1676_p10)
}
  0x1e   :  { %s1680_s1 = scalar_lea.vmem %s24_s17, 128  ;;  %p1685_p12 = scmp.lt.s32.totalorder %s24_s17, %s24_s17 }
  0x1f   :  { %p1681_p11 = scmp.ne.s32.totalorder %s24_s17, %s1680_s1  ;;  %p1686_p13 = scmp.lt.s32.totalorder %s1680_s1, %s1680_s1 }
  0x21   :  { %p1687_p0 = por %p1686_p13, %p1685_p12 }
  0x23   :  { %p1688_p1 = pnand %p1687_p0, %p1681_p11 }
  0x25   :  { %1691 = shalt.err (!%p1688_p1)
}
  0x26   :  { %26 = dma.hbm_to_vmem [thread:$0]  %s1886_s0, 128, %s24_s17, [#allocation4]  }
  0x27   :  { %s1692_s8 = scalar_lea.hbm %s1889_s3, 16384 }
  0x28   :  { %p1693_p2 = scmp.ne.s32.totalorder %s1889_s3, %s1692_s8  ;;  %p1696_p3 = scmp.lt.u32.totalorder %s1692_s8, %s1889_s3 }
  0x2a   :  { %p1698_p4 = pnand %p1696_p3, %p1693_p2 }
  0x2c   :  { %1701 = shalt.err (!%p1698_p4)
}
  0x2d   :  { %s1702_s12 = scalar_lea.vmem %s47_s19, 16384  ;;  %p1707_p6 = scmp.lt.s32.totalorder %s47_s19, %s47_s19 }
  0x2e   :  { %p1703_p5 = scmp.ne.s32.totalorder %s47_s19, %s1702_s12  ;;  %p1708_p7 = scmp.lt.s32.totalorder %s1702_s12, %s1702_s12 }
  0x30   :  { %p1709_p8 = por %p1708_p7, %p1707_p6 }
  0x32   :  { %p1710_p9 = pnand %p1709_p8, %p1703_p5 }
  0x34   :  { %1713 = shalt.err (!%p1710_p9)
}
  0x35   :  { %s1747_s0 = smov 256   ;;  %s1748_s13 = smov 16  }
  0x36   :  { %52 = dma.hbm_to_vmem [thread:$0]  %s1889_s3, 16384, %s47_s19, [#allocation7], %s1747_s0, %s1747_s0, %s1748_s13  }
  0x37   :  { %1736 = dma.done.wait [#allocation4], 128  }
  0x38   :  { %1737 = vsyncadd [#allocation4], 4294967168 }
  0x39   :  { %1738 = dma.done.wait [#allocation7], 18432  }
  0x3a   :  { %1739 = vsyncadd [#allocation7], 4294948864  ;;  %v1749_v1 = vmov 0.0   ;;  %v70_v2 = vld [vmem:[#allocation6 + $0x8] sm:$0xff]  ;;  %v69_v4 = vld [vmem:[#allocation6] sm:$0xff]  ;;  %vm107_vm0 = vcmask 261120  }
  0x3b   :  { %175 = vmatprep.mubr.f32.mxu0 %v1749_v1  ;;  %246 = vmatprep.mubr.f32.mxu1 %v1749_v1  ;;  %v74_v3 = vld [vmem:[#allocation6 + $0x28] sm:$0xff]  ;;  %v73_v6 = vld [vmem:[#allocation6 + $0x20] sm:$0xff]  ;;  %v72_v13 = vld [vmem:[#allocation6 + $0x18] sm:$0xff]  ;;  %vm1269_vm1 = vcmask 57344  }
  0x3c   :  { %v1417_v5 = vpack.c.bf16 %v74_v3, %v70_v2  ;;  %v78_v7 = vld [vmem:[#allocation6 + $0x48] sm:$0xff]  ;;  %v1419_v9 = vpack.c.bf16 %v73_v6, %v69_v4  ;;  %v77_v11 = vld [vmem:[#allocation6 + $0x40] sm:$0xff]  ;;  %v76_v14 = vld [vmem:[#allocation6 + $0x38] sm:$0xff] }
  0x3d   :  { %v82_v8 = vld [vmem:[#allocation6 + $0x68] sm:$0xff]  ;;  %v81_v12 = vld [vmem:[#allocation6 + $0x60] sm:$0xff]  ;;  %v71_v15 = vld [vmem:[#allocation6 + $0x10] sm:$0xff]  ;;  %v1425_v17 = vpack.c.bf16 %v76_v14, %v72_v13 }
  0x3e   :  { %v1421_v10 = vpack.c.bf16 %v82_v8, %v78_v7  ;;  %1418 = vmatprep.subr.bf16.mxu0 %v1417_v5  ;;  %v1423_v16 = vpack.c.bf16 %v81_v12, %v77_v11  ;;  %v75_v18 = vld [vmem:[#allocation6 + $0x30] sm:$0xff]  ;;  %v80_v19 = vld [vmem:[#allocation6 + $0x58] sm:$0xff] }
  0x3f   :  { %1420 = vmatpush1.bf16.msra.mxu0 %v1419_v9  ;;  %v84_v20 = vld [vmem:[#allocation6 + $0x78] sm:$0xff]  ;;  %v1427_v21 = vpack.c.bf16 %v75_v18, %v71_v15  ;;  %v79_v23 = vld [vmem:[#allocation6 + $0x50] sm:$0xff]  ;;  %1426 = vmatprep.subr.bf16.mxu1 %v1425_v17 }
  0x40   :  { %1422 = vmatprep.subr.bf16.mxu0 %v1421_v10  ;;  %v1429_v22 = vpack.c.bf16 %v84_v20, %v80_v19  ;;  %v83_v24 = vld [vmem:[#allocation6 + $0x70] sm:$0xff]  ;;  %v68_v25 = vld [vmem:[#allocation3] sm:$0xff] }
  0x41   :  { %v1458_v26 = vld [vmem:[#allocation8 + $0x4] ss:$16 sps:$4 sm:$0xff]   ;;  %1428 = vmatpush1.bf16.msra.mxu1 %v1427_v21  ;;  %v1431_v27 = vpack.c.bf16 %v83_v24, %v79_v23  ;;  %v1456_v28 = vld [vmem:[#allocation8] ss:$16 sps:$4 sm:$0xff]   ;;  %v1461_v29 = vld [vmem:[#allocation8 + $0xc] ss:$16 sps:$4 sm:$0xff]  }
  0x42   :  { %1430 = vmatprep.subr.bf16.mxu1 %v1429_v22  ;;  %v1464_v30 = vld [vmem:[#allocation8 + $0x24] ss:$16 sps:$4 sm:$0xff]   ;;  %v1459_v31 = vld [vmem:[#allocation8 + $0x8] ss:$16 sps:$4 sm:$0xff]   ;;  %v1462_v32 = vld [vmem:[#allocation8 + $0x20] ss:$16 sps:$4 sm:$0xff]  }
  0x43   :  { %1424 = vmatpush1.bf16.msra.mxu0 %v1423_v16  ;;  %v1467_v33 = vld [vmem:[#allocation8 + $0x2c] ss:$16 sps:$4 sm:$0xff]   ;;  %v1470_v34 = vld [vmem:[#allocation8 + $0x44] ss:$16 sps:$4 sm:$0xff]   ;;  %v1465_v35 = vld [vmem:[#allocation8 + $0x28] ss:$16 sps:$4 sm:$0xff]  }
  0x44   :  { %1051 = vmatprep.subr.bf16.mxu0 %v1458_v26  ;;  %v1468_v36 = vld [vmem:[#allocation8 + $0x40] ss:$16 sps:$4 sm:$0xff]   ;;  %v1473_v37 = vld [vmem:[#allocation8 + $0x4c] ss:$16 sps:$4 sm:$0xff]   ;;  %v1476_v38 = vld [vmem:[#allocation8 + $0x64] ss:$16 sps:$4 sm:$0xff]  }
  0x45   :  { %1432 = vmatpush1.bf16.msra.mxu1 %v1431_v27  ;;  %v1471_v39 = vld [vmem:[#allocation8 + $0x48] ss:$16 sps:$4 sm:$0xff]   ;;  %v1474_v40 = vld [vmem:[#allocation8 + $0x60] ss:$16 sps:$4 sm:$0xff]   ;;  %v1479_v41 = vld [vmem:[#allocation8 + $0x6c] ss:$16 sps:$4 sm:$0xff]  }
  0x46   :  { %1287 = vmatmul.mubr.msk.f32.vlgmr.msra.gmra.mrb[0].mxu0 %vm107_vm0, %v68_v25  ;;  %1133 = vmatprep.subr.bf16.mxu1 %v1461_v29  ;;  %v1482_v42 = vld [vmem:[#allocation8 + $0x84] ss:$16 sps:$4 sm:$0xff]   ;;  %v1477_v43 = vld [vmem:[#allocation8 + $0x68] ss:$16 sps:$4 sm:$0xff]   ;;  %v1480_v44 = vld [vmem:[#allocation8 + $0x80] ss:$16 sps:$4 sm:$0xff]   ;;  %v87_v29 = vlaneseq }
  0x47   :  { %1052 = vmatpush1.bf16.msra.mxu0 %v1456_v28  ;;  %v1485_v45 = vld [vmem:[#allocation8 + $0x8c] ss:$16 sps:$4 sm:$0xff]   ;;  %v1488_v46 = vld [vmem:[#allocation8 + $0xa4] ss:$16 sps:$4 sm:$0xff]   ;;  %v1483_v47 = vld [vmem:[#allocation8 + $0x88] ss:$16 sps:$4 sm:$0xff]  }
  0x48   :  { %1053 = vmatprep.subr.bf16.mxu0 %v1464_v30  ;;  %1288 = vmatmul.mubr.msk.f32.vlgmr.msra.gmra.mrb[0].mxu1 %vm107_vm0, %v68_v25  ;;  %v1486_v48 = vld [vmem:[#allocation8 + $0xa0] ss:$16 sps:$4 sm:$0xff]   ;;  %v1491_v49 = vld [vmem:[#allocation8 + $0xac] ss:$16 sps:$4 sm:$0xff]   ;;  %v1494_v50 = vld [vmem:[#allocation8 + $0xc4] ss:$16 sps:$4 sm:$0xff]  }
  0x49   :  { %1134 = vmatpush1.bf16.msra.mxu1 %v1459_v31  ;;  %v1489_v51 = vld [vmem:[#allocation8 + $0xa8] ss:$16 sps:$4 sm:$0xff]   ;;  %v1492_v52 = vld [vmem:[#allocation8 + $0xc0] ss:$16 sps:$4 sm:$0xff]   ;;  %v1497_v53 = vld [vmem:[#allocation8 + $0xcc] ss:$16 sps:$4 sm:$0xff]  }
  0x4a   :  { %1135 = vmatprep.subr.bf16.mxu1 %v1467_v33  ;;  %v1500_v54 = vld [vmem:[#allocation8 + $0xe4] ss:$16 sps:$4 sm:$0xff]   ;;  %v1495_v55 = vld [vmem:[#allocation8 + $0xc8] ss:$16 sps:$4 sm:$0xff]   ;;  %v1498_v56 = vld [vmem:[#allocation8 + $0xe0] ss:$16 sps:$4 sm:$0xff]  }
  0x4b   :  { %1054 = vmatpush1.bf16.msra.mxu0 %v1462_v32  ;;  %v1503_v57 = vld [vmem:[#allocation8 + $0xec] ss:$16 sps:$4 sm:$0xff]   ;;  %v1506_v58 = vld [vmem:[#allocation8 + $0x104] ss:$16 sps:$4 sm:$0xff]   ;;  %v1501_v59 = vld [vmem:[#allocation8 + $0xe8] ss:$16 sps:$4 sm:$0xff]  }
  0x4c   :  { %1055 = vmatprep.subr.bf16.mxu0 %v1470_v34  ;;  %v1504_v60 = vld [vmem:[#allocation8 + $0x100] ss:$16 sps:$4 sm:$0xff]   ;;  %v1509_v61 = vld [vmem:[#allocation8 + $0x10c] ss:$16 sps:$4 sm:$0xff]   ;;  %v1507_v62 = vld [vmem:[#allocation8 + $0x108] ss:$16 sps:$4 sm:$0xff]  }
  0x4d   :  { %1136 = vmatpush1.bf16.msra.mxu1 %v1465_v35  ;;  %v1512_v63 = vld [vmem:[#allocation8 + $0x124] ss:$16 sps:$4 sm:$0xff]   ;;  %v1510_v0 = vld [vmem:[#allocation8 + $0x120] ss:$16 sps:$4 sm:$0xff]   ;;  %v1515_v1 = vld [vmem:[#allocation8 + $0x12c] ss:$16 sps:$4 sm:$0xff]  }
  0x4e   :  { %1137 = vmatprep.subr.bf16.mxu1 %v1473_v37  ;;  %v1518_v2 = vld [vmem:[#allocation8 + $0x144] ss:$16 sps:$4 sm:$0xff]   ;;  %v1513_v3 = vld [vmem:[#allocation8 + $0x128] ss:$16 sps:$4 sm:$0xff]   ;;  %v1516_v4 = vld [vmem:[#allocation8 + $0x140] ss:$16 sps:$4 sm:$0xff]  }
  0x4f   :  { %1056 = vmatpush1.bf16.msra.mxu0 %v1468_v36  ;;  %v1521_v5 = vld [vmem:[#allocation8 + $0x14c] ss:$16 sps:$4 sm:$0xff]   ;;  %v1524_v6 = vld [vmem:[#allocation8 + $0x164] ss:$16 sps:$4 sm:$0xff]   ;;  %v1519_v7 = vld [vmem:[#allocation8 + $0x148] ss:$16 sps:$4 sm:$0xff]  }
  0x50   :  { %1057 = vmatprep.subr.bf16.mxu0 %v1476_v38  ;;  %v1522_v8 = vld [vmem:[#allocation8 + $0x160] ss:$16 sps:$4 sm:$0xff]   ;;  %v1527_v9 = vld [vmem:[#allocation8 + $0x16c] ss:$16 sps:$4 sm:$0xff]   ;;  %v1530_v10 = vld [vmem:[#allocation8 + $0x184] ss:$16 sps:$4 sm:$0xff]  }
  0x51   :  { %1138 = vmatpush1.bf16.msra.mxu1 %v1471_v39  ;;  %v1525_v11 = vld [vmem:[#allocation8 + $0x168] ss:$16 sps:$4 sm:$0xff]   ;;  %v1528_v12 = vld [vmem:[#allocation8 + $0x180] ss:$16 sps:$4 sm:$0xff]   ;;  %v1533_v13 = vld [vmem:[#allocation8 + $0x18c] ss:$16 sps:$4 sm:$0xff]  }
  0x52   :  { %1139 = vmatprep.subr.bf16.mxu1 %v1479_v41  ;;  %v1536_v14 = vld [vmem:[#allocation8 + $0x1a4] ss:$16 sps:$4 sm:$0xff]   ;;  %v1531_v15 = vld [vmem:[#allocation8 + $0x188] ss:$16 sps:$4 sm:$0xff]   ;;  %v1534_v16 = vld [vmem:[#allocation8 + $0x1a0] ss:$16 sps:$4 sm:$0xff]  }
  0x53   :  { %1058 = vmatpush1.bf16.msra.mxu0 %v1474_v40  ;;  %v1539_v17 = vld [vmem:[#allocation8 + $0x1ac] ss:$16 sps:$4 sm:$0xff]   ;;  %v1537_v18 = vld [vmem:[#allocation8 + $0x1a8] ss:$16 sps:$4 sm:$0xff]   ;;  %v1542_v19 = vld [vmem:[#allocation8 + $0x1c4] ss:$16 sps:$4 sm:$0xff]  }
  0x54   :  { %1059 = vmatprep.subr.bf16.mxu0 %v1482_v42  ;;  %v1545_v20 = vld [vmem:[#allocation8 + $0x1cc] ss:$16 sps:$4 sm:$0xff]   ;;  %v1540_v21 = vld [vmem:[#allocation8 + $0x1c0] ss:$16 sps:$4 sm:$0xff]   ;;  %v1543_v22 = vld [vmem:[#allocation8 + $0x1c8] ss:$16 sps:$4 sm:$0xff]  }
  0x55   :  { %1140 = vmatpush1.bf16.msra.mxu1 %v1477_v43  ;;  %v1548_v23 = vld [vmem:[#allocation8 + $0x1e4] ss:$16 sps:$4 sm:$0xff]   ;;  %v1551_v24 = vld [vmem:[#allocation8 + $0x1ec] ss:$16 sps:$4 sm:$0xff]   ;;  %v1546_v25 = vld [vmem:[#allocation8 + $0x1e0] ss:$16 sps:$4 sm:$0xff]  }
  0x56   :  { %1141 = vmatprep.subr.bf16.mxu1 %v1485_v45  ;;  %v1549_v26 = vld [vmem:[#allocation8 + $0x1e8] ss:$16 sps:$4 sm:$0xff]   ;;  %v1554_v27 = vld [vmem:[#allocation8 + $0x204] ss:$16 sps:$4 sm:$0xff]   ;;  %v1557_v28 = vld [vmem:[#allocation8 + $0x20c] ss:$16 sps:$4 sm:$0xff]  }
  0x57   :  { %1060 = vmatpush1.bf16.msra.mxu0 %v1480_v44  ;;  %v1832_v30 = vshrl.u32 %v87_v29, 7  ;;  %v1840_v32 = vld [vmem:[%s1888_s2] sm:$0xf] }
  0x58   :  { %1061 = vmatprep.subr.bf16.mxu0 %v1488_v46 }
  0x59   :  { %1142 = vmatpush1.bf16.msra.mxu1 %v1483_v47  ;;  %v1835_v31 = vsub.s32 0, %v1832_v30  ;;  %v1843_v33 = vsub.s32 1, %v1832_v30  ;;  %v1848_v35 = vsub.s32 3, %v1832_v30 }
  0x5a   :  { %1143 = vmatprep.subr.bf16.mxu1 %v1491_v49  ;;  %v1555_v49 = vld [vmem:[#allocation8 + $0x208] ss:$16 sps:$4 sm:$0xff]  }
  0x5b   :  { %1062 = vmatpush1.bf16.msra.mxu0 %v1486_v48  ;;  %v90_v34 = vrot.slane %v1840_v32, %v1835_v31  ;;  %v94_v36 = vrot.slane %v1840_v32, %v1843_v33  ;;  %v102_v40 = vrot.slane %v1840_v32, %v1848_v35  ;;  %v1552_v48 = vld [vmem:[#allocation8 + $0x200] ss:$16 sps:$4 sm:$0xff]  }
  0x5c   :  { %1063 = vmatprep.subr.bf16.mxu0 %v1494_v50 }
  0x5d   :  { %1144 = vmatpush1.bf16.msra.mxu1 %v1489_v51  ;;  %v1560_v51 = vld [vmem:[#allocation8 + $0x224] ss:$16 sps:$4 sm:$0xff]  }
  0x5e   :  { %1145 = vmatprep.subr.bf16.mxu1 %v1497_v53 }
  0x5f   :  { %1064 = vmatpush1.bf16.msra.mxu0 %v1492_v52  ;;  %v1563_v52 = vld [vmem:[#allocation8 + $0x22c] ss:$16 sps:$4 sm:$0xff]  }
  0x60   :  { %1065 = vmatprep.subr.bf16.mxu0 %v1500_v54 }
  0x61   :  { %1146 = vmatpush1.bf16.msra.mxu1 %v1495_v55  ;;  %v1558_v55 = vld [vmem:[#allocation8 + $0x220] ss:$16 sps:$4 sm:$0xff]  }
  0x62   :  { %1147 = vmatprep.subr.bf16.mxu1 %v1503_v57  ;;  %v1566_v57 = vld [vmem:[#allocation8 + $0x244] ss:$16 sps:$4 sm:$0xff]  }
  0x63   :  { %1066 = vmatpush1.bf16.msra.mxu0 %v1498_v56  ;;  %v1561_v56 = vld [vmem:[#allocation8 + $0x228] ss:$16 sps:$4 sm:$0xff]  }
  0x64   :  { %1067 = vmatprep.subr.bf16.mxu0 %v1506_v58  ;;  %v1569_v58 = vld [vmem:[#allocation8 + $0x24c] ss:$16 sps:$4 sm:$0xff]  }
  0x65   :  { %1148 = vmatpush1.bf16.msra.mxu1 %v1501_v59  ;;  %v1564_v59 = vld [vmem:[#allocation8 + $0x240] ss:$16 sps:$4 sm:$0xff]  }
  0x66   :  { %1149 = vmatprep.subr.bf16.mxu1 %v1509_v61  ;;  %v1572_v61 = vld [vmem:[#allocation8 + $0x264] ss:$16 sps:$4 sm:$0xff]  }
  0x67   :  { %1068 = vmatpush1.bf16.msra.mxu0 %v1504_v60  ;;  %v1567_v60 = vld [vmem:[#allocation8 + $0x248] ss:$16 sps:$4 sm:$0xff]  }
  0x68   :  { %1069 = vmatprep.subr.bf16.mxu0 %v1512_v63  ;;  %v1570_v63 = vld [vmem:[#allocation8 + $0x260] ss:$16 sps:$4 sm:$0xff]  }
  0x69   :  { %1150 = vmatpush1.bf16.msra.mxu1 %v1507_v62  ;;  %v1575_v62 = vld [vmem:[#allocation8 + $0x26c] ss:$16 sps:$4 sm:$0xff]  }
  0x6a   :  { %1151 = vmatprep.subr.bf16.mxu1 %v1515_v1  ;;  %v1578_v1 = vld [vmem:[#allocation8 + $0x284] ss:$16 sps:$4 sm:$0xff]  }
  0x6b   :  { %1070 = vmatpush1.bf16.msra.mxu0 %v1510_v0  ;;  %v1573_v0 = vld [vmem:[#allocation8 + $0x268] ss:$16 sps:$4 sm:$0xff]  }
  0x6c   :  { %1071 = vmatprep.subr.bf16.mxu0 %v1518_v2  ;;  %v1581_v2 = vld [vmem:[#allocation8 + $0x28c] ss:$16 sps:$4 sm:$0xff]  }
  0x6d   :  { %1152 = vmatpush1.bf16.msra.mxu1 %v1513_v3  ;;  %v1576_v3 = vld [vmem:[#allocation8 + $0x280] ss:$16 sps:$4 sm:$0xff]  }
  0x6e   :  { %1153 = vmatprep.subr.bf16.mxu1 %v1521_v5  ;;  %v1584_v5 = vld [vmem:[#allocation8 + $0x2a4] ss:$16 sps:$4 sm:$0xff]  }
  0x6f   :  { %1072 = vmatpush1.bf16.msra.mxu0 %v1516_v4  ;;  %v1579_v4 = vld [vmem:[#allocation8 + $0x288] ss:$16 sps:$4 sm:$0xff]  }
  0x70   :  { %1073 = vmatprep.subr.bf16.mxu0 %v1524_v6  ;;  %v1587_v6 = vld [vmem:[#allocation8 + $0x2ac] ss:$16 sps:$4 sm:$0xff]  }
  0x71   :  { %1154 = vmatpush1.bf16.msra.mxu1 %v1519_v7  ;;  %v1582_v7 = vld [vmem:[#allocation8 + $0x2a0] ss:$16 sps:$4 sm:$0xff]  }
  0x72   :  { %1155 = vmatprep.subr.bf16.mxu1 %v1527_v9  ;;  %v1590_v9 = vld [vmem:[#allocation8 + $0x2c4] ss:$16 sps:$4 sm:$0xff]  }
  0x73   :  { %1074 = vmatpush1.bf16.msra.mxu0 %v1522_v8  ;;  %v1585_v8 = vld [vmem:[#allocation8 + $0x2a8] ss:$16 sps:$4 sm:$0xff]  }
  0x74   :  { %1075 = vmatprep.subr.bf16.mxu0 %v1530_v10  ;;  %v1593_v10 = vld [vmem:[#allocation8 + $0x2cc] ss:$16 sps:$4 sm:$0xff]  }
  0x75   :  { %1156 = vmatpush1.bf16.msra.mxu1 %v1525_v11  ;;  %v1588_v11 = vld [vmem:[#allocation8 + $0x2c0] ss:$16 sps:$4 sm:$0xff]  }
  0x76   :  { %1157 = vmatprep.subr.bf16.mxu1 %v1533_v13  ;;  %v1596_v13 = vld [vmem:[#allocation8 + $0x2e4] ss:$16 sps:$4 sm:$0xff]  }
  0x77   :  { %1076 = vmatpush1.bf16.msra.mxu0 %v1528_v12  ;;  %v1591_v12 = vld [vmem:[#allocation8 + $0x2c8] ss:$16 sps:$4 sm:$0xff]  }
  0x78   :  { %1077 = vmatprep.subr.bf16.mxu0 %v1536_v14  ;;  %v1599_v14 = vld [vmem:[#allocation8 + $0x2ec] ss:$16 sps:$4 sm:$0xff]  }
  0x79   :  { %1158 = vmatpush1.bf16.msra.mxu1 %v1531_v15  ;;  %v1594_v15 = vld [vmem:[#allocation8 + $0x2e0] ss:$16 sps:$4 sm:$0xff]  }
  0x7a   :  { %1159 = vmatprep.subr.bf16.mxu1 %v1539_v17  ;;  %v1602_v17 = vld [vmem:[#allocation8 + $0x304] ss:$16 sps:$4 sm:$0xff]  }
  0x7b   :  { %1078 = vmatpush1.bf16.msra.mxu0 %v1534_v16  ;;  %v1597_v16 = vld [vmem:[#allocation8 + $0x2e8] ss:$16 sps:$4 sm:$0xff]  }
  0x7c   :  { %1079 = vmatprep.subr.bf16.mxu0 %v1542_v19  ;;  %v1600_v19 = vld [vmem:[#allocation8 + $0x300] ss:$16 sps:$4 sm:$0xff]  }
  0x7d   :  { %1160 = vmatpush1.bf16.msra.mxu1 %v1537_v18  ;;  %v1605_v18 = vld [vmem:[#allocation8 + $0x30c] ss:$16 sps:$4 sm:$0xff]  }
  0x7e   :  { %1161 = vmatprep.subr.bf16.mxu1 %v1545_v20  ;;  %v1603_v20 = vld [vmem:[#allocation8 + $0x308] ss:$16 sps:$4 sm:$0xff]  }
  0x7f   :  { %1080 = vmatpush1.bf16.msra.mxu0 %v1540_v21  ;;  %v1608_v21 = vld [vmem:[#allocation8 + $0x324] ss:$16 sps:$4 sm:$0xff]  }
  0x80   :  { %1081 = vmatprep.subr.bf16.mxu0 %v1548_v23  ;;  %v1606_v23 = vld [vmem:[#allocation8 + $0x320] ss:$16 sps:$4 sm:$0xff]  }
  0x81   :  { %1162 = vmatpush1.bf16.msra.mxu1 %v1543_v22  ;;  %v1611_v22 = vld [vmem:[#allocation8 + $0x32c] ss:$16 sps:$4 sm:$0xff]  }
  0x82   :  { %1163 = vmatprep.subr.bf16.mxu1 %v1551_v24  ;;  %v1609_v24 = vld [vmem:[#allocation8 + $0x328] ss:$16 sps:$4 sm:$0xff]  }
  0x83   :  { %1082 = vmatpush1.bf16.msra.mxu0 %v1546_v25  ;;  %v1614_v25 = vld [vmem:[#allocation8 + $0x344] ss:$16 sps:$4 sm:$0xff]  }
  0x84   :  { %1092 = vmatprep.subr.bf16.mxu0 %v1554_v27  ;;  %v1612_v27 = vld [vmem:[#allocation8 + $0x340] ss:$16 sps:$4 sm:$0xff]  }
  0x85   :  { %1164 = vmatpush1.bf16.msra.mxu1 %v1549_v26  ;;  %v1617_v26 = vld [vmem:[#allocation8 + $0x34c] ss:$16 sps:$4 sm:$0xff]  }
  0x86   :  { %1174 = vmatprep.subr.bf16.mxu1 %v1557_v28  ;;  %v1615_v28 = vld [vmem:[#allocation8 + $0x348] ss:$16 sps:$4 sm:$0xff]  }
 0x119   :  { %v177_v37 = vpop.f32.mrb[0].mxu0 }
 0x11a   :  { %v178_v38 = vadd.f32 %v177_v37, %v90_v34  ;;  %v179_v39 = vpop.f32.mrb[1].mxu0  ;;  %v1620_v34 = vld [vmem:[#allocation8 + $0x364] ss:$16 sps:$4 sm:$0xff]   ;;  %v1618_v37 = vld [vmem:[#allocation8 + $0x360] ss:$16 sps:$4 sm:$0xff]  }
 0x11b   :  { %v180_v41 = vadd.f32 %v179_v39, %v94_v36  ;;  %v1854_v43 = vpop.f32.mrb[0].mxu1  ;;  %v1623_v36 = vld [vmem:[#allocation8 + $0x36c] ss:$16 sps:$4 sm:$0xff]   ;;  %v1626_v39 = vld [vmem:[#allocation8 + $0x384] ss:$16 sps:$4 sm:$0xff]  }
 0x11c   :  { %v253_v42 = vmax.f32 %v178_v38, 0.0  ;;  %v250_v45 = vpop.f32.mrb[1].mxu1  ;;  %v1621_v38 = vld [vmem:[#allocation8 + $0x368] ss:$16 sps:$4 sm:$0xff]  }
 0x11d   :  { %v254_v44 = vmax.f32 %v180_v41, 0.0  ;;  %v251_v46 = vadd.f32 %v250_v45, %v102_v40  ;;  %v1629_v40 = vld [vmem:[#allocation8 + $0x38c] ss:$16 sps:$4 sm:$0xff]   ;;  %v1624_v41 = vld [vmem:[#allocation8 + $0x380] ss:$16 sps:$4 sm:$0xff]  }
 0x11e   :  { %v257_v50 = vpack.c.bf16 %v253_v42, %v253_v42  ;;  %v1627_v42 = vld [vmem:[#allocation8 + $0x388] ss:$16 sps:$4 sm:$0xff]   ;;  %v1635_v45 = vld [vmem:[#allocation8 + $0x3ac] ss:$16 sps:$4 sm:$0xff]  }
 0x11f   :  { %v258_v47 = vpack.c.bf16 %v254_v44, %v254_v44  ;;  %v256_v53 = vmax.f32 %v251_v46, 0.0  ;;  %v1632_v44 = vld [vmem:[#allocation8 + $0x3a4] ss:$16 sps:$4 sm:$0xff]   ;;  %v97_v46 = vsub.s32 2, %v1832_v30 }
 0x121   :  { %1083 = vmatprep.mubr.bf16.mxu0 %v258_v47  ;;  %1165 = vmatprep.mubr.bf16.mxu1 %v258_v47  ;;  %v260_v54 = vpack.c.bf16 %v256_v53, %v256_v53  ;;  %v1630_v47 = vld [vmem:[#allocation8 + $0x3a0] ss:$16 sps:$4 sm:$0xff]   ;;  %v1639_v53 = vld [vmem:[#allocation8 + $0x3c8] ss:$16 sps:$4 sm:$0xff]  }
 0x122   :  { %1084 = vmatmul.mubr.bf16.vlgmr.msra.gmra.mrb[4].mxu0 %v257_v50  ;;  %1166 = vmatmul.mubr.bf16.vlgmr.msra.gmra.mrb[4].mxu1 %v257_v50  ;;  %v1638_v50 = vld [vmem:[#allocation8 + $0x3c4] ss:$16 sps:$4 sm:$0xff]  }
 0x123   :  { %1093 = vmatpush1.bf16.msra.mxu0 %v1552_v48  ;;  %1175 = vmatpush1.bf16.msra.mxu1 %v1555_v49  ;;  %v1633_v48 = vld [vmem:[#allocation8 + $0x3a8] ss:$16 sps:$4 sm:$0xff]   ;;  %v98_v49 = vrot.slane %v1840_v32, %v97_v46 }
 0x124   :  { %1094 = vmatprep.subr.bf16.mxu0 %v1560_v51  ;;  %1176 = vmatprep.subr.bf16.mxu1 %v1563_v52  ;;  %v1641_v51 = vld [vmem:[#allocation8 + $0x3cc] ss:$16 sps:$4 sm:$0xff]   ;;  %v1636_v52 = vld [vmem:[#allocation8 + $0x3c0] ss:$16 sps:$4 sm:$0xff]  }
 0x125   :  { %1124 = vmatprep.mubr.bf16.mxu0 %v260_v54  ;;  %1206 = vmatprep.mubr.bf16.mxu1 %v260_v54  ;;  %v249_v54 = vadd.f32 %v1854_v43, %v98_v49  ;;  %v389_v43 = vld [vmem:[%s1890_s4] sm:$0xf]  ;;  %s1751_s4 = smov [#allocation9]  }
 0x127   :  { %1095 = vmatpush1.bf16.msra.mxu0 %v1558_v55  ;;  %1177 = vmatpush1.bf16.msra.mxu1 %v1561_v56  ;;  %v1644_v55 = vld [vmem:[#allocation8 + $0x3e4] ss:$16 sps:$4 sm:$0xff]   ;;  %v1647_v56 = vld [vmem:[#allocation8 + $0x3ec] ss:$16 sps:$4 sm:$0xff]  }
 0x128   :  { %1096 = vmatprep.subr.bf16.mxu0 %v1566_v57  ;;  %1178 = vmatprep.subr.bf16.mxu1 %v1569_v58  ;;  %v1642_v57 = vld [vmem:[#allocation8 + $0x3e0] ss:$16 sps:$4 sm:$0xff]   ;;  %v1645_v58 = vld [vmem:[#allocation8 + $0x3e8] ss:$16 sps:$4 sm:$0xff]  }
 0x12b   :  { %1097 = vmatpush1.bf16.msra.mxu0 %v1564_v59  ;;  %1179 = vmatpush1.bf16.msra.mxu1 %v1567_v60  ;;  %v255_v59 = vmax.f32 %v249_v54, 0.0  ;;  %v1750_v60 = vmov 0  }
 0x12c   :  { %1098 = vmatprep.subr.bf16.mxu0 %v1572_v61  ;;  %1180 = vmatprep.subr.bf16.mxu1 %v1575_v62  ;;  %v394_v61 = vrot.slane %v389_v43, %v1835_v31  ;;  %v402_v62 = vrot.slane %v389_v43, %v97_v46 }
 0x12d   :  { %v259_v32 = vpack.c.bf16 %v255_v59, %v255_v59  ;;  %1455 = vset.pattern.permute.xlu0 %v1750_v60 }
 0x12f   :  { %1099 = vmatpush1.bf16.msra.mxu0 %v1570_v63  ;;  %1181 = vmatpush1.bf16.msra.mxu1 %v1573_v0  ;;  %v1219_v63 = vld [vmem:[%s1891_s5] sm:$0xf]  ;;  %v398_v0 = vrot.slane %v389_v43, %v1843_v33  ;;  %s1277_s5 = sshll.u32 %s1751_s4, 4  ;;  %s1278_s5 = int_to_ptr.vmem [resolvable:$true] %s1277_s5 }
 0x130   :  { %1100 = vmatprep.subr.bf16.mxu0 %v1578_v1  ;;  %1182 = vmatprep.subr.bf16.mxu1 %v1581_v2  ;;  %v406_v1 = vrot.slane %v389_v43, %v1848_v35  ;;  %s1714_s20 = scalar_lea.vmem %s1278_s5, 16  ;;  %s1718_s21 = scalar_lea.vmem %s1278_s5, 32 }
 0x131   :  { %p1715_p10 = scmp.ne.s32.totalorder %s1278_s5, %s1714_s20  ;;  %p1719_p11 = scmp.lt.s32.totalorder %s1278_s5, %s1278_s5 }
 0x132   :  { %p1720_p12 = scmp.lt.s32.totalorder %s1718_s21, %s1714_s20 }
 0x133   :  { %1101 = vmatpush1.bf16.msra.mxu0 %v1576_v3  ;;  %1183 = vmatpush1.bf16.msra.mxu1 %v1579_v4 }
 0x134   :  { %1102 = vmatprep.subr.bf16.mxu0 %v1584_v5  ;;  %1184 = vmatprep.subr.bf16.mxu1 %v1587_v6  ;;  %v1224_v5 = vrot.slane %v1219_v63, %v1835_v31  ;;  %p1721_p13 = por %p1720_p12, %p1719_p11 }
 0x136   :  { %p1722_p0 = pnand %p1721_p13, %p1715_p10 }
 0x137   :  { %1103 = vmatpush1.bf16.msra.mxu0 %v1582_v7  ;;  %1185 = vmatpush1.bf16.msra.mxu1 %v1585_v8 }
 0x138   :  { %1104 = vmatprep.subr.bf16.mxu0 %v1590_v9  ;;  %1186 = vmatprep.subr.bf16.mxu1 %v1593_v10  ;;  %v1228_v10 = vrot.slane %v1219_v63, %v1843_v33  ;;  %v1250_v33 = vld [vmem:[#allocation2] sm:$0x1] }
 0x13b   :  { %1105 = vmatpush1.bf16.msra.mxu0 %v1588_v11  ;;  %1187 = vmatpush1.bf16.msra.mxu1 %v1591_v12 }
 0x13c   :  { %1106 = vmatprep.subr.bf16.mxu0 %v1596_v13  ;;  %1188 = vmatprep.subr.bf16.mxu1 %v1599_v14 }
 0x13f   :  { %1107 = vmatpush1.bf16.msra.mxu0 %v1594_v15  ;;  %1189 = vmatpush1.bf16.msra.mxu1 %v1597_v16 }
 0x140   :  { %1108 = vmatprep.subr.bf16.mxu0 %v1602_v17  ;;  %1190 = vmatprep.subr.bf16.mxu1 %v1605_v18  ;;  %v1232_v18 = vrot.slane %v1219_v63, %v97_v46 }
 0x143   :  { %1109 = vmatpush1.bf16.msra.mxu0 %v1600_v19  ;;  %1191 = vmatpush1.bf16.msra.mxu1 %v1603_v20 }
 0x144   :  { %1110 = vmatprep.subr.bf16.mxu0 %v1608_v21  ;;  %1192 = vmatprep.subr.bf16.mxu1 %v1611_v22 }
 0x147   :  { %1111 = vmatpush1.bf16.msra.mxu0 %v1606_v23  ;;  %1193 = vmatpush1.bf16.msra.mxu1 %v1609_v24  ;;  %v1236_v23 = vrot.slane %v1219_v63, %v1848_v35 }
 0x148   :  { %1112 = vmatprep.subr.bf16.mxu0 %v1614_v25  ;;  %1194 = vmatprep.subr.bf16.mxu1 %v1617_v26 }
 0x14b   :  { %1113 = vmatpush1.bf16.msra.mxu0 %v1612_v27  ;;  %1195 = vmatpush1.bf16.msra.mxu1 %v1615_v28 }
 0x14c   :  { %1114 = vmatprep.subr.bf16.mxu0 %v1620_v34  ;;  %1196 = vmatprep.subr.bf16.mxu1 %v1623_v36  ;;  %v1263_v36 = vand.u32 127, %v87_v29 }
 0x14f   :  { %1115 = vmatpush1.bf16.msra.mxu0 %v1618_v37  ;;  %1197 = vmatpush1.bf16.msra.mxu1 %v1621_v38  ;;  %v1266_v38 = vsub.s32 %v1263_v36, %v1832_v30 }
 0x150   :  { %1116 = vmatprep.subr.bf16.mxu0 %v1626_v39  ;;  %1198 = vmatprep.subr.bf16.mxu1 %v1629_v40 }
 0x153   :  { %1117 = vmatpush1.bf16.msra.mxu0 %v1624_v41  ;;  %1199 = vmatpush1.bf16.msra.mxu1 %v1627_v42 }
 0x154   :  { %1118 = vmatprep.subr.bf16.mxu0 %v1632_v44  ;;  %1200 = vmatprep.subr.bf16.mxu1 %v1635_v45 }
 0x157   :  { %1119 = vmatpush1.bf16.msra.mxu0 %v1630_v47  ;;  %1201 = vmatpush1.bf16.msra.mxu1 %v1633_v48 }
 0x158   :  { %1120 = vmatprep.subr.bf16.mxu0 %v1638_v50  ;;  %1202 = vmatprep.subr.bf16.mxu1 %v1641_v51 }
 0x15b   :  { %1121 = vmatpush1.bf16.msra.mxu0 %v1636_v52  ;;  %1203 = vmatpush1.bf16.msra.mxu1 %v1639_v53 }
 0x15c   :  { %1122 = vmatprep.subr.bf16.mxu0 %v1644_v55  ;;  %1204 = vmatprep.subr.bf16.mxu1 %v1647_v56 }
 0x15f   :  { %1123 = vmatpush1.bf16.msra.mxu0 %v1642_v57  ;;  %1205 = vmatpush1.bf16.msra.mxu1 %v1645_v58 }
 0x162   :  { %1125 = vmatmul.mubr.bf16.vlgmr.msra.gmra.mrb[4].mxu0 %v259_v32  ;;  %1207 = vmatmul.mubr.bf16.vlgmr.msra.gmra.mrb[4].mxu1 %v259_v32 }
 0x235   :  { %v1126_v2 = vpop.f32.mrb[4].mxu0  ;;  %v1208_v3 = vpop.f32.mrb[4].mxu1 }
 0x236   :  { %v1433_v4 = vadd.f32 %v1126_v2, %v394_v61  ;;  %v1435_v6 = vadd.f32 %v1208_v3, %v402_v62  ;;  %v1128_v7 = vpop.f32.mrb[5].mxu0  ;;  %v1210_v8 = vpop.f32.mrb[5].mxu1 }
 0x237   :  { %v1434_v9 = vadd.f32 %v1128_v7, %v398_v0  ;;  %v1436_v11 = vadd.f32 %v1210_v8, %v406_v1  ;;  %v1130_v12 = vpop.f32.mrb[6].mxu0  ;;  %v1212_v13 = vpop.f32.mrb[6].mxu1 }
 0x238   :  { %v1215_v14 = vmax.f32 %v1433_v4, 0.0  ;;  %v1131_v15 = vpop.f32.mrb[7].mxu0  ;;  %v1213_v16 = vpop.f32.mrb[7].mxu1  ;;  %v1217_v17 = vmax.f32 %v1435_v6, 0.0 }
 0x239   :  { %v1216_v19 = vmax.f32 %v1434_v9, 0.0  ;;  %v1218_v22 = vmax.f32 %v1436_v11, 0.0 }
 0x23a   :  { %v1241_v20 = vmul.f32 %v1224_v5, %v1215_v14  ;;  %v1243_v24 = vmul.f32 %v1232_v18, %v1217_v17 }
 0x23b   :  { %v1242_v21 = vmul.f32 %v1228_v10, %v1216_v19  ;;  %v1244_v26 = vmul.f32 %v1236_v23, %v1218_v22 }
 0x23d   :  { %v1245_v25 = vadd.f32 %v1242_v21, %v1241_v20 }
 0x23f   :  { %v1246_v27 = vadd.f32 %v1245_v25, %v1243_v24 }
 0x241   :  { %v1247_v28 = vadd.f32 %v1246_v27, %v1244_v26 }
 0x243   :  { %1248 = vadd.xlane.f32.xlu0 %v1247_v28 }
 0x259   :  { %1253 = vperm.xlu0 %1455, %v1250_v33  }
 0x2d0   :  { %v1249_v34 = vpop.xlane.xlu0 %1248 }
 0x2d8   :  { %v1254_v37 = vpop.permute.xlu0 %1253 }
 0x2d9   :  { %v1259_v39 = vrot.slane %v1254_v37, %v1835_v31 }
 0x2db   :  { %v1260_v40 = vadd.f32 %v1259_v39, %v1249_v34 }
 0x2dd   :  { %v1267_v35 = vrot.slane %v1260_v40, %v1266_v38 }
 0x2df   :  { %1270 = vst.msk [vmem:[#allocation9] sm:$0x1] %vm1269_vm1, %v1267_v35 }
 0x2e0   :  { %1725 = shalt.err (!%p1722_p0)
}
 0x2e1   :  { %s1726_s24 = scalar_lea.hbm %s1893_s7, 16 }
 0x2e2   :  { %p1727_p1 = scmp.ne.s32.totalorder %s1893_s7, %s1726_s24  ;;  %p1730_p2 = scmp.lt.u32.totalorder %s1726_s24, %s1893_s7 }
 0x2e4   :  { %p1732_p3 = pnand %p1730_p2, %p1727_p1 }
 0x2e6   :  { %1735 = shalt.err (!%p1732_p3)
}
 0x2e7   :  { %1280 = dma.vmem_to_hbm [thread:$0]  %s1278_s5, 16, %s1893_s7, [#allocation5]  }
 0x2e8   :  { %1740 = dma.done.wait [#allocation5], 16  }
 0x2e9   :  { %1741 = vsyncadd [#allocation5], 4294967280 }
 0x2ea   :  { %1284 = vsyncpa [#allocation4], 1 }
 0x2eb   :  { %1285 = vsyncpa [#allocation7], 1 }
 0x2ec   :  { %1286 = vsyncpa [#allocation5], 1 }

</bundles_post_ra>
